<compile_context>
chip_gen: v7x
topology: tpu7x:2x2x1
jax: 0.10.0
libtpu: 0.0.40
codegen_flags: <defaults>
</compile_context>

<pallas_src>
import functools

import jax
import jax.numpy as jnp
import numpy as np
from jax.experimental import pallas as pl
from jax.experimental.pallas import tpu as pltpu


def _pair(v):
    """Replicates the module's kernel_size / stride normalization."""
    if isinstance(v, int):
        return (v, v)
    v = tuple(v)
    if len(v) == 1:
        return (v[0], v[0])
    return (v[0], v[1])


def _ds(start, size, stride=1):
    """Static (possibly strided) slice helper."""
    if stride == 1:
        return pl.ds(start, size)
    return pl.ds(start, size, stride=stride)


def _maxpool_kernel(x_ref, o_ref, rowmax_ref, *,
                    kh, kw, sh, sw, pad_top, pad_left, pad_right):
    nb, h, w, ct = x_ref.shape
    _, ho, wo, _ = o_ref.shape
    dt = x_ref.dtype
    zero = jnp.array(0, dtype=dt)          # F.pad pads with 0

    # ----- Stage 1 (first!): H-direction max via cheap leading-axis strided
    # selection directly from the input block; result height is Ho, not Hp. ---
    oy_lo = max(0, -(-pad_top // sh))                  # first fully-interior row
    oy_hi = min(ho - 1, (h - kh + pad_top) // sh)      # last fully-interior row
    n_rows = oy_hi - oy_lo + 1
    if n_rows > 0:
        base = oy_lo * sh - pad_top
        acc = x_ref[:, _ds(base, n_rows, sh), :, :]
        for dy in range(1, kh):
            acc = jnp.maximum(acc, x_ref[:, _ds(base + dy, n_rows, sh), :, :])
        rowmax_ref[:, _ds(oy_lo, n_rows), _ds(0, w), :] = acc

    # Boundary output rows (window touches top/bottom zero padding): reduce over
    # the in-bounds taps only, then fold in the pad value 0 once.
    for oy in list(range(0, oy_lo)) + list(range(oy_hi + 1, ho)):
        taps = [oy * sh - pad_top + dy for dy in range(kh)
                if 0 <= oy * sh - pad_top + dy < h]
        if taps:
            r = x_ref[:, _ds(taps[0], 1), :, :]
            for iy in taps[1:]:
                r = jnp.maximum(r, x_ref[:, _ds(iy, 1), :, :])
            r = jnp.maximum(r, zero)
        else:
            r = jnp.zeros((nb, 1, w, ct), dt)
        rowmax_ref[:, _ds(oy, 1), _ds(0, w), :] = r

    # Zero ONLY the right-pad strip of the scratch (<= kw-1 columns).  Left
    # padding is handled by shifting load starts below, so the data stays at
    # sublane offset 0 (aligned, unmasked stores above).
    if pad_right > 0:
        rowmax_ref[:, :, _ds(w, pad_right), :] = jnp.zeros(
            (nb, ho, pad_right, ct), dt)

    # ----- Stage 2: W-direction max (stride-sw sublane-strided loads on the
    # Ho-high scratch; right-pad zeros are already baked in). -----------------
    ox_lo = max(0, -(-pad_left // sw))                 # first col w/o left pad
    n_cols = wo - ox_lo
    if n_cols > 0:
        base = ox_lo * sw - pad_left
        acc = rowmax_ref[:, :, _ds(base, n_cols, sw), :]
        for dx in range(1, kw):
            acc = jnp.maximum(acc,
                              rowmax_ref[:, :, _ds(base + dx, n_cols, sw), :])
        o_ref[:, :, _ds(ox_lo, n_cols), :] = acc

    # Left-boundary output columns (window touches the left zero padding).
    for ox in range(0, ox_lo):
        cols = [ox * sw - pad_left + dx for dx in range(kw)
                if ox * sw - pad_left + dx >= 0]
        r = rowmax_ref[:, :, _ds(cols[0], 1), :]
        for ci in cols[1:]:
            r = jnp.maximum(r, rowmax_ref[:, :, _ds(ci, 1), :])
        o_ref[:, :, _ds(ox, 1), :] = jnp.maximum(r, zero)


def maxpool2d_static_same_padding(x, kernel_size=3, stride=2):
    """NHWC forward of MaxPool2dStaticSamePadding.  x: (N, H, W, C)."""
    kh, kw = _pair(kernel_size)
    sh, sw = _pair(stride)
    n, h, w, c = x.shape

    ho = -(-h // sh)                       # ceil(H / stride_h)
    wo = -(-w // sw)                       # ceil(W / stride_w)
    hp = sh * (ho - 1) + kh                # padded extent consumed by the pool
    wp = sw * (wo - 1) + kw
    extra_v, extra_h = hp - h, wp - w
    # TODO(synk): kernel < stride implies a negative F.pad (cropping) in the
    # PyTorch module; unused by BiFPN's MaxPool2dStaticSamePadding(3, 2).
    assert extra_v >= 0 and extra_h >= 0, "kernel_size must be >= stride"
    pad_top = extra_v // 2
    pad_left = extra_h // 2
    pad_right = extra_h - pad_left
    ws = w + pad_right                     # scratch width: right pad only

    # Lane-dense channel tiling whenever possible.
    ct = 128 if (c % 128 == 0) else c

    itemsize = jnp.dtype(x.dtype).itemsize

    def phys(s0, s1, s2):                  # rough physical VMEM bytes of a block
        return s0 * (-(-s1 // 8) * 8) * (-(-s2 // 128) * 128) * itemsize

    per_img = (2 * phys(h, w, ct)          # input block, double-buffered
               + 2 * phys(ho, wo, ct)      # output block, double-buffered
               + phys(ho, ws, ct))         # row-max scratch

    # Batch several images per grid step for small pyramid levels so per-step
    # overhead does not dominate (P5-P7 in BiFPN).
    budget = 2 << 20
    nb = 1
    for d in range(n, 0, -1):
        if n % d == 0 and d * per_img <= budget:
            nb = d
            break
    block_bytes = nb * per_img
    # Explicit VMEM limit from the real footprint (v5e default scoped VMEM is
    # 16 MiB), clamped well under v7x's 64 MiB physical VMEM.
    vmem_limit = int(min(48 << 20, max(4 * block_bytes + (1 << 20), 32 << 20)))

    grid = (n // nb, c // ct)
    kernel = functools.partial(
        _maxpool_kernel, kh=kh, kw=kw, sh=sh, sw=sw,
        pad_top=pad_top, pad_left=pad_left, pad_right=pad_right)

    return pl.pallas_call(
        kernel,
        out_shape=jax.ShapeDtypeStruct((n, ho, wo, c), x.dtype),
        grid_spec=pltpu.PrefetchScalarGridSpec(
            num_scalar_prefetch=0,
            grid=grid,
            in_specs=[pl.BlockSpec((nb, h, w, ct), lambda i, j: (i, 0, 0, j))],
            out_specs=pl.BlockSpec((nb, ho, wo, ct), lambda i, j: (i, 0, 0, j)),
            scratch_shapes=[
                pltpu.VMEM((nb, ho, ws, ct), x.dtype),   # H-reduced row maxima
            ],
        ),
        compiler_params=pltpu.CompilerParams(
            dimension_semantics=("parallel", "parallel"),
            vmem_limit_bytes=vmem_limit),
    )(x)


def maxpool2d_static_same_padding_nchw(x, kernel_size=3, stride=2):
    """PyTorch-layout (NCHW) interface.

    NOTE: the two transposes are full HBM read+write passes and dominate the
    cost of this bandwidth-bound op — prefer the NHWC entry point end-to-end.
    """
    y = maxpool2d_static_same_padding(
        jnp.transpose(x, (0, 2, 3, 1)), kernel_size, stride)
    return jnp.transpose(y, (0, 3, 1, 2))


# ---------------- pure-JAX reference (for correctness check) ----------------
def ref_maxpool_nhwc(x, kernel_size=3, stride=2):
    kh, kw = _pair(kernel_size)
    sh, sw = _pair(stride)
    n, h, w, c = x.shape
    ho = -(-h // sh)
    wo = -(-w // sw)
    extra_v = sh * (ho - 1) + kh - h
    extra_h = sw * (wo - 1) + kw - w
    top = extra_v // 2
    bottom = extra_v - top
    left = extra_h // 2
    right = extra_h - left
    xp = jnp.pad(x, ((0, 0), (top, bottom), (left, right), (0, 0)))  # zeros, like F.pad
    return jax.lax.reduce_window(xp, -jnp.inf, jax.lax.max,
                                 (1, kh, kw, 1), (1, sh, sw, 1), 'VALID')


if __name__ == "__main__":
    key = jax.random.PRNGKey(0)
    k1, k2, k3 = jax.random.split(key, 3)

    # NHWC, even spatial size (right/bottom pad only), lane-dense channels.
    x1 = jax.random.normal(k1, (2, 16, 16, 128), jnp.float32)
    # NHWC, odd / rectangular spatial size (left/top pad too), C = 64.
    x2 = jax.random.normal(k2, (2, 15, 17, 64), jnp.float32)
    # PyTorch-style NCHW input with small channel count.
    x3 = jax.random.normal(k3, (2, 4, 16, 16), jnp.float32)

    o1 = jax.block_until_ready(maxpool2d_static_same_padding(x1, 3, 2))
    o2 = jax.block_until_ready(maxpool2d_static_same_padding(x2, 3, 2))
    o3 = jax.block_until_ready(maxpool2d_static_same_padding_nchw(x3, 3, 2))

    r1 = ref_maxpool_nhwc(x1, 3, 2)
    r2 = ref_maxpool_nhwc(x2, 3, 2)
    r3 = jnp.transpose(
        ref_maxpool_nhwc(jnp.transpose(x3, (0, 2, 3, 1)), 3, 2), (0, 3, 1, 2))

    assert o1.shape == (2, 8, 8, 128), o1.shape
    assert o2.shape == (2, 8, 9, 64), o2.shape
    assert o3.shape == (2, 4, 8, 8), o3.shape
    np.testing.assert_allclose(np.asarray(o1), np.asarray(r1), rtol=0, atol=0)
    np.testing.assert_allclose(np.asarray(o2), np.asarray(r2), rtol=0, atol=0)
    np.testing.assert_allclose(np.asarray(o3), np.asarray(r3), rtol=0, atol=0)

    print("KERNEL_OK")
</pallas_src>

<mosaic_0001>
module attributes {stable_mosaic.version = 11 : i64} {
  func.func @_maxpool_kernel(%arg0: i32, %arg1: i32, %arg2: memref<2x16x16x128xf32, #tpu.memory_space<vmem>>, %arg3: memref<2x8x8x128xf32, #tpu.memory_space<vmem>>, %arg4: memref<2x8x17x128xf32, #tpu.memory_space<vmem>>) attributes {dimension_semantics = [#tpu.dimension_semantics<parallel>, #tpu.dimension_semantics<parallel>], iteration_bounds = array<i64: 1, 1>, scalar_prefetch = 0 : i64, scratch_operands = 1 : i64, tpu.core_type = #tpu.core_type<tc>, window_params = [{transform_indices = @transform_0, window_bounds = array<i64: 2, 16, 16, 128>}, {transform_indices = @transform_1, window_bounds = array<i64: 2, 8, 8, 128>}]} {
    %c0 = arith.constant 0 : index
    %c0_0 = arith.constant 0 : index
    %c0_1 = arith.constant 0 : index
    %c0_2 = arith.constant 0 : index
    %0 = tpu.strided_load %arg2[%c0, %c0_0, %c0_1, %c0_2] {strides = array<i32: 1, 2, 1, 1>} : memref<2x16x16x128xf32, #tpu.memory_space<vmem>>, vector<2x7x16x128xf32>
    %c0_3 = arith.constant 0 : index
    %c1 = arith.constant 1 : index
    %c0_4 = arith.constant 0 : index
    %c0_5 = arith.constant 0 : index
    %1 = tpu.strided_load %arg2[%c0_3, %c1, %c0_4, %c0_5] {strides = array<i32: 1, 2, 1, 1>} : memref<2x16x16x128xf32, #tpu.memory_space<vmem>>, vector<2x7x16x128xf32>
    %2 = arith.maximumf %0, %1 : vector<2x7x16x128xf32>
    %c0_6 = arith.constant 0 : index
    %c2 = arith.constant 2 : index
    %c0_7 = arith.constant 0 : index
    %c0_8 = arith.constant 0 : index
    %3 = tpu.strided_load %arg2[%c0_6, %c2, %c0_7, %c0_8] {strides = array<i32: 1, 2, 1, 1>} : memref<2x16x16x128xf32, #tpu.memory_space<vmem>>, vector<2x7x16x128xf32>
    %4 = arith.maximumf %2, %3 : vector<2x7x16x128xf32>
    %c0_9 = arith.constant 0 : index
    %c0_10 = arith.constant 0 : index
    %c0_11 = arith.constant 0 : index
    %c0_12 = arith.constant 0 : index
    %5 = vector.load %arg4[%c0_9, %c0_10, %c0_11, %c0_12] : memref<2x8x17x128xf32, #tpu.memory_space<vmem>>, vector<2x7x16x128xf32>
    tpu.vector_store %arg4[%c0_9, %c0_10, %c0_11, %c0_12], %4 {strides = array<i32>} : memref<2x8x17x128xf32, #tpu.memory_space<vmem>>, vector<2x7x16x128xf32>,
    %c0_13 = arith.constant 0 : index
    %c14 = arith.constant 14 : index
    %c0_14 = arith.constant 0 : index
    %c0_15 = arith.constant 0 : index
    %6 = vector.load %arg2[%c0_13, %c14, %c0_14, %c0_15] : memref<2x16x16x128xf32, #tpu.memory_space<vmem>>, vector<2x1x16x128xf32>
    %c0_16 = arith.constant 0 : index
    %c15 = arith.constant 15 : index
    %c0_17 = arith.constant 0 : index
    %c0_18 = arith.constant 0 : index
    %7 = vector.load %arg2[%c0_16, %c15, %c0_17, %c0_18] : memref<2x16x16x128xf32, #tpu.memory_space<vmem>>, vector<2x1x16x128xf32>
    %8 = arith.maximumf %6, %7 : vector<2x1x16x128xf32>
    %cst = arith.constant 0.000000e+00 : f32
    %9 = vector.broadcast %cst : f32 to vector<2x1x16x128xf32>
    %10 = arith.maximumf %8, %9 : vector<2x1x16x128xf32>
    %c0_19 = arith.constant 0 : index
    %c7 = arith.constant 7 : index
    %c0_20 = arith.constant 0 : index
    %c0_21 = arith.constant 0 : index
    %11 = vector.load %arg4[%c0_19, %c7, %c0_20, %c0_21] : memref<2x8x17x128xf32, #tpu.memory_space<vmem>>, vector<2x1x16x128xf32>
    tpu.vector_store %arg4[%c0_19, %c7, %c0_20, %c0_21], %10 {strides = array<i32>} : memref<2x8x17x128xf32, #tpu.memory_space<vmem>>, vector<2x1x16x128xf32>,
    %cst_22 = arith.constant 0.000000e+00 : f32
    %12 = vector.broadcast %cst_22 : f32 to vector<2x8x1x128xf32>
    %c0_23 = arith.constant 0 : index
    %c0_24 = arith.constant 0 : index
    %c16 = arith.constant 16 : index
    %c0_25 = arith.constant 0 : index
    %13 = vector.load %arg4[%c0_23, %c0_24, %c16, %c0_25] : memref<2x8x17x128xf32, #tpu.memory_space<vmem>>, vector<2x8x1x128xf32>
    tpu.vector_store %arg4[%c0_23, %c0_24, %c16, %c0_25], %12 {strides = array<i32>} : memref<2x8x17x128xf32, #tpu.memory_space<vmem>>, vector<2x8x1x128xf32>,
    %c0_26 = arith.constant 0 : index
    %c0_27 = arith.constant 0 : index
    %c0_28 = arith.constant 0 : index
    %c0_29 = arith.constant 0 : index
    %14 = tpu.strided_load %arg4[%c0_26, %c0_27, %c0_28, %c0_29] {strides = array<i32: 1, 1, 2, 1>} : memref<2x8x17x128xf32, #tpu.memory_space<vmem>>, vector<2x8x8x128xf32>
    %c0_30 = arith.constant 0 : index
    %c0_31 = arith.constant 0 : index
    %c1_32 = arith.constant 1 : index
    %c0_33 = arith.constant 0 : index
    %15 = tpu.strided_load %arg4[%c0_30, %c0_31, %c1_32, %c0_33] {strides = array<i32: 1, 1, 2, 1>} : memref<2x8x17x128xf32, #tpu.memory_space<vmem>>, vector<2x8x8x128xf32>
    %16 = arith.maximumf %14, %15 : vector<2x8x8x128xf32>
    %c0_34 = arith.constant 0 : index
    %c0_35 = arith.constant 0 : index
    %c2_36 = arith.constant 2 : index
    %c0_37 = arith.constant 0 : index
    %17 = tpu.strided_load %arg4[%c0_34, %c0_35, %c2_36, %c0_37] {strides = array<i32: 1, 1, 2, 1>} : memref<2x8x17x128xf32, #tpu.memory_space<vmem>>, vector<2x8x8x128xf32>
    %18 = arith.maximumf %16, %17 : vector<2x8x8x128xf32>
    %c0_38 = arith.constant 0 : index
    %c0_39 = arith.constant 0 : index
    %c0_40 = arith.constant 0 : index
    %c0_41 = arith.constant 0 : index
    %19 = vector.load %arg3[%c0_38, %c0_39, %c0_40, %c0_41] : memref<2x8x8x128xf32, #tpu.memory_space<vmem>>, vector<2x8x8x128xf32>
    tpu.vector_store %arg3[%c0_38, %c0_39, %c0_40, %c0_41], %18 {strides = array<i32>} : memref<2x8x8x128xf32, #tpu.memory_space<vmem>>, vector<2x8x8x128xf32>,
    return
  }
  func.func @transform_0(%arg0: i32, %arg1: i32) -> (i32, i32, i32, i32) {
    %c0_i32 = arith.constant 0 : i32
    %c0_i32_0 = arith.constant 0 : i32
    %c0_i32_1 = arith.constant 0 : i32
    return %arg0, %c0_i32, %c0_i32_0, %arg1 : i32, i32, i32, i32
  }
  func.func @transform_1(%arg0: i32, %arg1: i32) -> (i32, i32, i32, i32) {
    %c0_i32 = arith.constant 0 : i32
    %c0_i32_0 = arith.constant 0 : i32
    %c0_i32_1 = arith.constant 0 : i32
    return %arg0, %c0_i32, %c0_i32_0, %arg1 : i32, i32, i32, i32
  }
}

</mosaic_0001>

<bundles_post_ra>
// kernel: tpu_custom_call.1
= control target key start
LH: loop header
LB: loop body
LE: loop exit
PB: predicated region body
PF: predicated region fallthrough
CT: control target
= control target key end

     0   :  { %6 = vsyncpa [#allocation4], 0  ;;  %s501_s0 = inlined_call_operand.hbm [shape: f32[2,16,16,128], index: 0, kind: input, shape index: {}]   ;;  %s502_s1 = inlined_call_operand.hbm [shape: f32[2,8,8,128], index: 1, kind: output, shape index: {}]  }
   0x1   :  { %7 = vsyncpa [#allocation5], 0  ;;  %s445_s6 = smov [#allocation3]   ;;  %s397_s10 = scalar_lea.hbm %s501_s0, 8192 }
   0x2   :  { %s13_s7 = sshll.u32 %s445_s6, 4  ;;  %p398_p0 = scmp.ne.s32.totalorder %s501_s0, %s397_s10  ;;  %s14_s7 = int_to_ptr.vmem [resolvable:$true] %s13_s7 }
   0x3   :  { %p401_p1 = scmp.lt.u32.totalorder %s397_s10, %s501_s0 }
   0x5   :  { %p403_p2 = pnand %p401_p1, %p398_p0 }
   0x7   :  { %406 = shalt.err (!%p403_p2)
}
   0x8   :  { %s407_s15 = scalar_lea.vmem %s14_s7, 8192  ;;  %p412_p4 = scmp.lt.s32.totalorder %s14_s7, %s14_s7 }
   0x9   :  { %p408_p3 = scmp.ne.s32.totalorder %s14_s7, %s407_s15  ;;  %p413_p5 = scmp.lt.s32.totalorder %s407_s15, %s407_s15 }
   0xb   :  { %p414_p6 = por %p413_p5, %p412_p4 }
   0xd   :  { %p415_p7 = pnand %p414_p6, %p408_p3 }
   0xf   :  { %418 = shalt.err (!%p415_p7)
}
  0x10   :  { %s446_s16 = smov 128   ;;  %s447_s17 = smov 8  }
  0x11   :  { %19 = dma.hbm_to_vmem [thread:$0]  %s501_s0, 8192, %s14_s7, [#allocation4], %s446_s16, %s446_s16, %s447_s17  }
  0x12   :  { %441 = dma.done.wait [#allocation4], 8192  }
  0x13   :  { %442 = vsyncadd [#allocation4], 4294959104  ;;  %v448_v0 = vmov 0.0   ;;  %v23_v1 = vld [vmem:[#allocation3] sm:$0xff]  ;;  %v52_v2 = vld [vmem:[#allocation3 + $0x10] sm:$0xff]  ;;  %s449_s0 = smov [#allocation6]  }
  0x14   :  { %216 = vst [vmem:[#allocation2 + $0x10] sm:$0x1] %v448_v0  ;;  %217 = vst [vmem:[#allocation2 + $0x28] sm:$0x1] %v448_v0  ;;  %v109_v3 = vld [vmem:[#allocation3 + $0x20] sm:$0xff]  ;;  %v80_v4 = vmax.f32 %v23_v1, %v52_v2  ;;  %v24_v5 = vld [vmem:[#allocation3 + $0x8] sm:$0xff] }
  0x15   :  { %218 = vst [vmem:[#allocation2 + $0x40] sm:$0x1] %v448_v0  ;;  %219 = vst [vmem:[#allocation2 + $0x58] sm:$0x1] %v448_v0  ;;  %v53_v6 = vld [vmem:[#allocation3 + $0x18] sm:$0xff]  ;;  %v110_v7 = vld [vmem:[#allocation3 + $0x28] sm:$0xff] }
  0x16   :  { %220 = vst [vmem:[#allocation2 + $0x70] sm:$0x1] %v448_v0  ;;  %221 = vst [vmem:[#allocation2 + $0x88] sm:$0x1] %v448_v0  ;;  %v81_v8 = vmax.f32 %v24_v5, %v53_v6  ;;  %v54_v9 = vld [vmem:[#allocation3 + $0x30] sm:$0xff]  ;;  %v111_v10 = vld [vmem:[#allocation3 + $0x40] sm:$0xff]  ;;  %v137_v12 = vmax.f32 %v80_v4, %v109_v3 }
  0x17   :  { %222 = vst [vmem:[#allocation2 + $0xa0] sm:$0x1] %v448_v0  ;;  %223 = vst [vmem:[#allocation2 + $0xb8] sm:$0x1] %v448_v0  ;;  %v55_v11 = vld [vmem:[#allocation3 + $0x38] sm:$0xff]  ;;  %v82_v13 = vmax.f32 %v109_v3, %v54_v9  ;;  %v112_v15 = vld [vmem:[#allocation3 + $0x48] sm:$0xff] }
  0x18   :  { %224 = vst [vmem:[#allocation2 + $0xd0] sm:$0x1] %v448_v0  ;;  %225 = vst [vmem:[#allocation2 + $0xe8] sm:$0x1] %v448_v0  ;;  %v83_v14 = vmax.f32 %v110_v7, %v55_v11  ;;  %v56_v16 = vld [vmem:[#allocation3 + $0x50] sm:$0xff]  ;;  %v113_v17 = vld [vmem:[#allocation3 + $0x60] sm:$0xff]  ;;  %v138_v18 = vmax.f32 %v81_v8, %v110_v7 }
  0x19   :  { %226 = vst [vmem:[#allocation2 + $0x100] sm:$0x1] %v448_v0  ;;  %227 = vst [vmem:[#allocation2 + $0x118] sm:$0x1] %v448_v0  ;;  %v84_v19 = vmax.f32 %v111_v10, %v56_v16  ;;  %v57_v20 = vld [vmem:[#allocation3 + $0x58] sm:$0xff]  ;;  %v114_v21 = vld [vmem:[#allocation3 + $0x68] sm:$0xff]  ;;  %v139_v23 = vmax.f32 %v82_v13, %v111_v10 }
  0x1a   :  { %228 = vst [vmem:[#allocation2 + $0x130] sm:$0x1] %v448_v0  ;;  %229 = vst [vmem:[#allocation2 + $0x148] sm:$0x1] %v448_v0  ;;  %v58_v22 = vld [vmem:[#allocation3 + $0x70] sm:$0xff]  ;;  %v140_v24 = vmax.f32 %v83_v14, %v112_v15  ;;  %v85_v25 = vmax.f32 %v112_v15, %v57_v20  ;;  %v115_v27 = vld [vmem:[#allocation3 + $0x80] sm:$0xff] }
  0x1b   :  { %230 = vst [vmem:[#allocation2 + $0x160] sm:$0x1] %v448_v0  ;;  %231 = vst [vmem:[#allocation2 + $0x178] sm:$0x1] %v448_v0  ;;  %v86_v26 = vmax.f32 %v113_v17, %v58_v22  ;;  %v59_v28 = vld [vmem:[#allocation3 + $0x78] sm:$0xff]  ;;  %v116_v29 = vld [vmem:[#allocation3 + $0x88] sm:$0xff]  ;;  %v141_v30 = vmax.f32 %v84_v19, %v113_v17 }
  0x1c   :  { %165 = vst [vmem:[#allocation2] sm:$0xff] %v137_v12  ;;  %166 = vst [vmem:[#allocation2 + $0x8] sm:$0xff] %v138_v18  ;;  %v87_v31 = vmax.f32 %v114_v21, %v59_v28  ;;  %v60_v32 = vld [vmem:[#allocation3 + $0x90] sm:$0xff]  ;;  %v117_v33 = vld [vmem:[#allocation3 + $0xa0] sm:$0xff]  ;;  %v142_v35 = vmax.f32 %v85_v25, %v114_v21  ;;  %s483_s20 = sshll.u32 %s449_s0, 4  ;;  %s381_s20 = int_to_ptr.vmem [resolvable:$true] %s483_s20 }
  0x1d   :  { %v61_v34 = vld [vmem:[#allocation3 + $0x98] sm:$0xff]  ;;  %167 = vst [vmem:[#allocation2 + $0x18] sm:$0xff] %v139_v23  ;;  %168 = vst [vmem:[#allocation2 + $0x20] sm:$0xff] %v140_v24  ;;  %v143_v36 = vmax.f32 %v86_v26, %v115_v27  ;;  %v88_v37 = vmax.f32 %v115_v27, %v60_v32  ;;  %v118_v39 = vld [vmem:[#allocation3 + $0xa8] sm:$0xff]  ;;  %s419_s21 = scalar_lea.vmem %s381_s20, 2048  ;;  %p424_p9 = scmp.lt.s32.totalorder %s381_s20, %s381_s20 }
  0x1e   :  { %v89_v38 = vmax.f32 %v116_v29, %v61_v34  ;;  %v62_v40 = vld [vmem:[#allocation3 + $0xb0] sm:$0xff]  ;;  %v119_v41 = vld [vmem:[#allocation3 + $0xc0] sm:$0xff]  ;;  %169 = vst [vmem:[#allocation2 + $0x30] sm:$0xff] %v141_v30  ;;  %v144_v42 = vmax.f32 %v87_v31, %v116_v29  ;;  %v63_v44 = vld [vmem:[#allocation3 + $0xb8] sm:$0xff]  ;;  %p420_p8 = scmp.ne.s32.totalorder %s381_s20, %s419_s21  ;;  %p425_p10 = scmp.lt.s32.totalorder %s419_s21, %s419_s21 }
  0x1f   :  { %v90_v43 = vmax.f32 %v117_v33, %v62_v40  ;;  %v120_v45 = vld [vmem:[#allocation3 + $0xc8] sm:$0xff]  ;;  %v64_v46 = vld [vmem:[#allocation3 + $0xd0] sm:$0xff]  ;;  %170 = vst [vmem:[#allocation2 + $0x38] sm:$0xff] %v142_v35  ;;  %171 = vst [vmem:[#allocation2 + $0x48] sm:$0xff] %v143_v36  ;;  %v145_v47 = vmax.f32 %v88_v37, %v117_v33  ;;  %v91_v49 = vmax.f32 %v118_v39, %v63_v44 }
  0x20   :  { %v146_v48 = vmax.f32 %v89_v38, %v118_v39  ;;  %v92_v50 = vmax.f32 %v119_v41, %v64_v46  ;;  %v475_v51 = vld [vmem:[#allocation3 + $0xe0] sm:$0xff]  ;;  %v65_v52 = vld [vmem:[#allocation3 + $0xd8] sm:$0xff]  ;;  %v477_v53 = vld [vmem:[#allocation3 + $0xe8] sm:$0xff]  ;;  %172 = vst [vmem:[#allocation2 + $0x50] sm:$0xff] %v144_v42  ;;  %p426_p11 = por %p425_p10, %p424_p9 }
  0x21   :  { %v147_v54 = vmax.f32 %v90_v43, %v119_v41  ;;  %v93_v55 = vmax.f32 %v120_v45, %v65_v52  ;;  %v37_v56 = vld [vmem:[#allocation3 + $0x100] sm:$0xff]  ;;  %v66_v57 = vld [vmem:[#allocation3 + $0x110] sm:$0xff]  ;;  %173 = vst [vmem:[#allocation2 + $0x60] sm:$0xff] %v145_v47  ;;  %v148_v59 = vmax.f32 %v91_v49, %v120_v45  ;;  %v38_v62 = vld [vmem:[#allocation3 + $0x108] sm:$0xff] }
  0x22   :  { %v123_v58 = vld [vmem:[#allocation3 + $0x120] sm:$0xff]  ;;  %174 = vst [vmem:[#allocation2 + $0x68] sm:$0xff] %v146_v48  ;;  %v149_v60 = vmax.f32 %v92_v50, %v475_v51  ;;  %v94_v61 = vmax.f32 %v37_v56, %v66_v57  ;;  %v67_v63 = vld [vmem:[#allocation3 + $0x118] sm:$0xff]  ;;  %v124_v0 = vld [vmem:[#allocation3 + $0x128] sm:$0xff]  ;;  %p427_p12 = pnand %p426_p11, %p420_p8 }
  0x23   :  { %175 = vst [vmem:[#allocation2 + $0x78] sm:$0xff] %v147_v54  ;;  %v150_v1 = vmax.f32 %v93_v55, %v477_v53  ;;  %v95_v2 = vmax.f32 %v38_v62, %v67_v63  ;;  %v68_v3 = vld [vmem:[#allocation3 + $0x130] sm:$0xff]  ;;  %v125_v4 = vld [vmem:[#allocation3 + $0x140] sm:$0xff]  ;;  %v69_v5 = vld [vmem:[#allocation3 + $0x138] sm:$0xff] }
  0x24   :  { %176 = vst [vmem:[#allocation2 + $0x80] sm:$0xff] %v148_v59  ;;  %177 = vst [vmem:[#allocation2 + $0x90] sm:$0xff] %v149_v60  ;;  %v151_v6 = vmax.f32 %v94_v61, %v123_v58  ;;  %v96_v7 = vmax.f32 %v123_v58, %v68_v3  ;;  %v97_v8 = vmax.f32 %v124_v0, %v69_v5  ;;  %v126_v9 = vld [vmem:[#allocation3 + $0x148] sm:$0xff]  ;;  %v70_v10 = vld [vmem:[#allocation3 + $0x150] sm:$0xff] }
  0x25   :  { %v127_v11 = vld [vmem:[#allocation3 + $0x160] sm:$0xff]  ;;  %178 = vst [vmem:[#allocation2 + $0x98] sm:$0xff] %v150_v1  ;;  %v152_v12 = vmax.f32 %v95_v2, %v124_v0  ;;  %v98_v13 = vmax.f32 %v125_v4, %v70_v10  ;;  %v71_v14 = vld [vmem:[#allocation3 + $0x158] sm:$0xff]  ;;  %v128_v15 = vld [vmem:[#allocation3 + $0x168] sm:$0xff] }
  0x26   :  { %v72_v16 = vld [vmem:[#allocation3 + $0x170] sm:$0xff]  ;;  %179 = vst [vmem:[#allocation2 + $0xc0] sm:$0xff] %v151_v6  ;;  %v153_v17 = vmax.f32 %v96_v7, %v125_v4  ;;  %v154_v18 = vmax.f32 %v97_v8, %v126_v9  ;;  %v99_v19 = vmax.f32 %v126_v9, %v71_v14  ;;  %v129_v21 = vld [vmem:[#allocation3 + $0x180] sm:$0xff]  ;;  %v73_v22 = vld [vmem:[#allocation3 + $0x178] sm:$0xff] }
  0x27   :  { %v100_v20 = vmax.f32 %v127_v11, %v72_v16  ;;  %v130_v23 = vld [vmem:[#allocation3 + $0x188] sm:$0xff]  ;;  %180 = vst [vmem:[#allocation2 + $0xc8] sm:$0xff] %v152_v12  ;;  %v155_v24 = vmax.f32 %v98_v13, %v127_v11  ;;  %v101_v25 = vmax.f32 %v128_v15, %v73_v22  ;;  %v74_v26 = vld [vmem:[#allocation3 + $0x190] sm:$0xff]  ;;  %v131_v27 = vld [vmem:[#allocation3 + $0x1a0] sm:$0xff] }
  0x28   :  { %v75_v28 = vld [vmem:[#allocation3 + $0x198] sm:$0xff]  ;;  %181 = vst [vmem:[#allocation2 + $0xd8] sm:$0xff] %v153_v17  ;;  %182 = vst [vmem:[#allocation2 + $0xe0] sm:$0xff] %v154_v18  ;;  %v156_v29 = vmax.f32 %v99_v19, %v128_v15  ;;  %v102_v31 = vmax.f32 %v129_v21, %v74_v26  ;;  %v132_v33 = vld [vmem:[#allocation3 + $0x1a8] sm:$0xff] }
  0x29   :  { %v157_v30 = vmax.f32 %v100_v20, %v129_v21  ;;  %v103_v32 = vmax.f32 %v130_v23, %v75_v28  ;;  %v76_v34 = vld [vmem:[#allocation3 + $0x1b0] sm:$0xff]  ;;  %v133_v35 = vld [vmem:[#allocation3 + $0x1c0] sm:$0xff]  ;;  %183 = vst [vmem:[#allocation2 + $0xf0] sm:$0xff] %v155_v24  ;;  %v158_v36 = vmax.f32 %v101_v25, %v130_v23  ;;  %v77_v38 = vld [vmem:[#allocation3 + $0x1b8] sm:$0xff] }
  0x2a   :  { %v104_v37 = vmax.f32 %v131_v27, %v76_v34  ;;  %v134_v39 = vld [vmem:[#allocation3 + $0x1c8] sm:$0xff]  ;;  %v78_v40 = vld [vmem:[#allocation3 + $0x1d0] sm:$0xff]  ;;  %184 = vst [vmem:[#allocation2 + $0xf8] sm:$0xff] %v156_v29  ;;  %v159_v41 = vmax.f32 %v102_v31, %v131_v27  ;;  %v105_v43 = vmax.f32 %v132_v33, %v77_v38  ;;  %v135_v45 = vld [vmem:[#allocation3 + $0x1e0] sm:$0xff] }
  0x2b   :  { %185 = vst [vmem:[#allocation2 + $0x108] sm:$0xff] %v157_v30  ;;  %v160_v42 = vmax.f32 %v103_v32, %v132_v33  ;;  %v106_v44 = vmax.f32 %v133_v35, %v78_v40  ;;  %v79_v46 = vld [vmem:[#allocation3 + $0x1d8] sm:$0xff]  ;;  %v136_v47 = vld [vmem:[#allocation3 + $0x1e8] sm:$0xff]  ;;  %186 = vst [vmem:[#allocation2 + $0x110] sm:$0xff] %v158_v36 }
  0x2c   :  { %v161_v48 = vmax.f32 %v104_v37, %v133_v35  ;;  %v107_v49 = vmax.f32 %v134_v39, %v79_v46  ;;  %v199_v50 = vld [vmem:[#allocation3 + $0xf0] sm:$0xff]  ;;  %v200_v52 = vld [vmem:[#allocation3 + $0xf8] sm:$0xff]  ;;  %187 = vst [vmem:[#allocation2 + $0x120] sm:$0xff] %v159_v41  ;;  %v162_v55 = vmax.f32 %v105_v43, %v134_v39  ;;  %v232_v60 = vld [vmem:[#allocation2] ss:$2 sm:$0xff] }
  0x2d   :  { %v201_v54 = vld [vmem:[#allocation3 + $0x1f0] sm:$0xff]  ;;  %188 = vst [vmem:[#allocation2 + $0x128] sm:$0xff] %v160_v42  ;;  %v163_v56 = vmax.f32 %v106_v44, %v135_v45  ;;  %v203_v57 = vmax.f32 %v475_v51, %v199_v50  ;;  %v204_v58 = vmax.f32 %v477_v53, %v200_v52  ;;  %v202_v59 = vld [vmem:[#allocation3 + $0x1f8] sm:$0xff]  ;;  %v264_v61 = vld [vmem:[#allocation2 + $0x1] ss:$2 sm:$0xff] }
  0x2e   :  { %189 = vst [vmem:[#allocation2 + $0x138] sm:$0xff] %v161_v48  ;;  %v164_v62 = vmax.f32 %v107_v49, %v136_v47  ;;  %v205_v63 = vmax.f32 %v135_v45, %v201_v54  ;;  %v206_v0 = vmax.f32 %v136_v47, %v202_v59  ;;  %v295_v1 = vmax.f32 %v232_v60, %v264_v61  ;;  %v234_v2 = vld [vmem:[#allocation2 + $0x18] ss:$2 sm:$0xff]  ;;  %v266_v3 = vld [vmem:[#allocation2 + $0x19] ss:$2 sm:$0xff] }
  0x2f   :  { %190 = vst [vmem:[#allocation2 + $0x140] sm:$0xff] %v162_v55  ;;  %191 = vst [vmem:[#allocation2 + $0x150] sm:$0xff] %v163_v56  ;;  %v207_v4 = vmax.f32 %v203_v57, 0.0  ;;  %v208_v5 = vmax.f32 %v204_v58, 0.0  ;;  %v312_v6 = vld [vmem:[#allocation2 + $0x2] ss:$2 sm:$0xff]  ;;  %v296_v7 = vmax.f32 %v234_v2, %v266_v3 }
  0x30   :  { %v236_v8 = vld [vmem:[#allocation2 + $0x30] ss:$2 sm:$0xff]  ;;  %192 = vst [vmem:[#allocation2 + $0x158] sm:$0xff] %v164_v62  ;;  %v209_v51 = vmax.f32 %v205_v63, 0.0  ;;  %v210_v53 = vmax.f32 %v206_v0, 0.0  ;;  %v343_v9 = vmax.f32 %v295_v1, %v312_v6 }
  0x31   :  { %v314_v10 = vld [vmem:[#allocation2 + $0x1a] ss:$2 sm:$0xff]  ;;  %v268_v11 = vld [vmem:[#allocation2 + $0x31] ss:$2 sm:$0xff]  ;;  %212 = vst [vmem:[#allocation2 + $0xa8] sm:$0xff] %v207_v4  ;;  %213 = vst [vmem:[#allocation2 + $0xb0] sm:$0xff] %v208_v5 }
  0x32   :  { %v344_v12 = vmax.f32 %v296_v7, %v314_v10  ;;  %v297_v13 = vmax.f32 %v236_v8, %v268_v11  ;;  %v238_v14 = vld [vmem:[#allocation2 + $0x48] ss:$2 sm:$0xff]  ;;  %v270_v15 = vld [vmem:[#allocation2 + $0x49] ss:$2 sm:$0xff]  ;;  %214 = vst [vmem:[#allocation2 + $0x168] sm:$0xff] %v209_v51  ;;  %215 = vst [vmem:[#allocation2 + $0x170] sm:$0xff] %v210_v53 }
  0x33   :  { %359 = vst [vmem:[#allocation6] sm:$0xff] %v343_v9  ;;  %v316_v16 = vld [vmem:[#allocation2 + $0x32] ss:$2 sm:$0xff]  ;;  %v298_v17 = vmax.f32 %v238_v14, %v270_v15  ;;  %v272_v19 = vld [vmem:[#allocation2 + $0x61] ss:$2 sm:$0xff] }
  0x34   :  { %v240_v18 = vld [vmem:[#allocation2 + $0x60] ss:$2 sm:$0xff]  ;;  %360 = vst [vmem:[#allocation6 + $0x8] sm:$0xff] %v344_v12  ;;  %v345_v20 = vmax.f32 %v297_v13, %v316_v16  ;;  %v274_v24 = vld [vmem:[#allocation2 + $0x79] ss:$2 sm:$0xff] }
  0x35   :  { %v318_v21 = vld [vmem:[#allocation2 + $0x4a] ss:$2 sm:$0xff]  ;;  %v299_v22 = vmax.f32 %v240_v18, %v272_v19  ;;  %v276_v29 = vld [vmem:[#allocation2 + $0x91] ss:$2 sm:$0xff]  ;;  %v322_v31 = vld [vmem:[#allocation2 + $0x7a] ss:$2 sm:$0xff] }
  0x36   :  { %v242_v23 = vld [vmem:[#allocation2 + $0x78] ss:$2 sm:$0xff]  ;;  %v346_v25 = vmax.f32 %v298_v17, %v318_v21  ;;  %361 = vst [vmem:[#allocation6 + $0x10] sm:$0xff] %v345_v20  ;;  %v280_v34 = vld [vmem:[#allocation2 + $0xc1] ss:$2 sm:$0xff] }
  0x37   :  { %v320_v26 = vld [vmem:[#allocation2 + $0x62] ss:$2 sm:$0xff]  ;;  %v300_v27 = vmax.f32 %v242_v23, %v274_v24  ;;  %v324_v36 = vld [vmem:[#allocation2 + $0x92] ss:$2 sm:$0xff]  ;;  %v282_v39 = vld [vmem:[#allocation2 + $0xd9] ss:$2 sm:$0xff] }
  0x38   :  { %v244_v28 = vld [vmem:[#allocation2 + $0x90] ss:$2 sm:$0xff]  ;;  %v347_v30 = vmax.f32 %v299_v22, %v320_v26  ;;  %v248_v33 = vld [vmem:[#allocation2 + $0xc0] ss:$2 sm:$0xff]  ;;  %362 = vst [vmem:[#allocation6 + $0x18] sm:$0xff] %v346_v25 }
  0x39   :  { %v301_v32 = vmax.f32 %v244_v28, %v276_v29  ;;  %v348_v35 = vmax.f32 %v300_v27, %v322_v31  ;;  %v303_v37 = vmax.f32 %v248_v33, %v280_v34  ;;  %v250_v38 = vld [vmem:[#allocation2 + $0xd8] ss:$2 sm:$0xff]  ;;  %v284_v44 = vld [vmem:[#allocation2 + $0xf1] ss:$2 sm:$0xff]  ;;  %v246_v45 = vld [vmem:[#allocation2 + $0xa8] ss:$2 sm:$0xff] }
  0x3a   :  { %363 = vst [vmem:[#allocation6 + $0x20] sm:$0xff] %v347_v30  ;;  %v328_v41 = vld [vmem:[#allocation2 + $0xc2] ss:$2 sm:$0xff]  ;;  %v304_v42 = vmax.f32 %v250_v38, %v282_v39  ;;  %v278_v46 = vld [vmem:[#allocation2 + $0xa9] ss:$2 sm:$0xff] }
  0x3b   :  { %v349_v40 = vmax.f32 %v301_v32, %v324_v36  ;;  %v252_v43 = vld [vmem:[#allocation2 + $0xf0] ss:$2 sm:$0xff]  ;;  %364 = vst [vmem:[#allocation6 + $0x28] sm:$0xff] %v348_v35  ;;  %v351_v47 = vmax.f32 %v303_v37, %v328_v41  ;;  %v302_v50 = vmax.f32 %v246_v45, %v278_v46  ;;  %v286_v56 = vld [vmem:[#allocation2 + $0x109] ss:$2 sm:$0xff] }
  0x3c   :  { %v330_v48 = vld [vmem:[#allocation2 + $0xda] ss:$2 sm:$0xff]  ;;  %v305_v49 = vmax.f32 %v252_v43, %v284_v44  ;;  %v326_v57 = vld [vmem:[#allocation2 + $0xaa] ss:$2 sm:$0xff]  ;;  %v288_v61 = vld [vmem:[#allocation2 + $0x121] ss:$2 sm:$0xff] }
  0x3d   :  { %365 = vst [vmem:[#allocation6 + $0x30] sm:$0xff] %v349_v40  ;;  %v352_v52 = vmax.f32 %v304_v42, %v330_v48  ;;  %v332_v54 = vld [vmem:[#allocation2 + $0xf2] ss:$2 sm:$0xff]  ;;  %367 = vst [vmem:[#allocation6 + $0x40] sm:$0xff] %v351_v47  ;;  %v350_v62 = vmax.f32 %v302_v50, %v326_v57  ;;  %v290_v2 = vld [vmem:[#allocation2 + $0x139] ss:$2 sm:$0xff] }
  0x3e   :  { %v254_v55 = vld [vmem:[#allocation2 + $0x108] ss:$2 sm:$0xff]  ;;  %v353_v58 = vmax.f32 %v305_v49, %v332_v54  ;;  %v258_v1 = vld [vmem:[#allocation2 + $0x138] ss:$2 sm:$0xff]  ;;  %v292_v7 = vld [vmem:[#allocation2 + $0x151] ss:$2 sm:$0xff] }
  0x3f   :  { %v306_v59 = vmax.f32 %v254_v55, %v286_v56  ;;  %v256_v60 = vld [vmem:[#allocation2 + $0x120] ss:$2 sm:$0xff]  ;;  %368 = vst [vmem:[#allocation6 + $0x48] sm:$0xff] %v352_v52  ;;  %v308_v5 = vmax.f32 %v258_v1, %v290_v2  ;;  %v260_v6 = vld [vmem:[#allocation2 + $0x150] ss:$2 sm:$0xff]  ;;  %366 = vst [vmem:[#allocation6 + $0x38] sm:$0xff] %v350_v62 }
  0x40   :  { %v334_v63 = vld [vmem:[#allocation2 + $0x10a] ss:$2 sm:$0xff]  ;;  %v307_v0 = vmax.f32 %v256_v60, %v288_v61  ;;  %369 = vst [vmem:[#allocation6 + $0x50] sm:$0xff] %v353_v58  ;;  %v338_v51 = vld [vmem:[#allocation2 + $0x13a] ss:$2 sm:$0xff]  ;;  %v309_v53 = vmax.f32 %v260_v6, %v292_v7 }
  0x41   :  { %v354_v3 = vmax.f32 %v306_v59, %v334_v63  ;;  %v336_v4 = vld [vmem:[#allocation2 + $0x122] ss:$2 sm:$0xff]  ;;  %v294_v10 = vld [vmem:[#allocation2 + $0x169] ss:$2 sm:$0xff]  ;;  %v356_v11 = vmax.f32 %v308_v5, %v338_v51  ;;  %v340_v12 = vld [vmem:[#allocation2 + $0x152] ss:$2 sm:$0xff] }
  0x42   :  { %v355_v8 = vmax.f32 %v307_v0, %v336_v4  ;;  %v262_v9 = vld [vmem:[#allocation2 + $0x168] ss:$2 sm:$0xff]  ;;  %v357_v14 = vmax.f32 %v309_v53, %v340_v12 }
  0x43   :  { %370 = vst [vmem:[#allocation6 + $0x58] sm:$0xff] %v354_v3  ;;  %v310_v13 = vmax.f32 %v262_v9, %v294_v10  ;;  %v342_v15 = vld [vmem:[#allocation2 + $0x16a] ss:$2 sm:$0xff]  ;;  %372 = vst [vmem:[#allocation6 + $0x68] sm:$0xff] %v356_v11 }
  0x44   :  { %371 = vst [vmem:[#allocation6 + $0x60] sm:$0xff] %v355_v8  ;;  %373 = vst [vmem:[#allocation6 + $0x70] sm:$0xff] %v357_v14 }
  0x45   :  { %v358_v16 = vmax.f32 %v310_v13, %v342_v15 }
  0x47   :  { %374 = vst [vmem:[#allocation6 + $0x78] sm:$0xff] %v358_v16 }
  0x48   :  { %430 = shalt.err (!%p427_p12)
}
  0x49   :  { %s431_s24 = scalar_lea.hbm %s502_s1, 2048 }
  0x4a   :  { %p432_p13 = scmp.ne.s32.totalorder %s502_s1, %s431_s24  ;;  %p435_p0 = scmp.lt.u32.totalorder %s431_s24, %s502_s1 }
  0x4c   :  { %p437_p1 = pnand %p435_p0, %p432_p13 }
  0x4e   :  { %440 = shalt.err (!%p437_p1)
}
  0x4f   :  { %386 = dma.vmem_to_hbm [thread:$0]  %s381_s20, 2048, %s502_s1, [#allocation5], %s446_s16, %s446_s16, %s447_s17  }
  0x50   :  { %443 = dma.done.wait [#allocation5], 2048  }
  0x51   :  { %444 = vsyncadd [#allocation5], 4294965248 }
  0x52   :  { %390 = vsyncpa [#allocation4], 1 }
  0x53   :  { %391 = vsyncpa [#allocation5], 1 }

</bundles_post_ra>
